<compile_context>
chip_gen: v7x
topology: tpu7x:2x2x1
jax: 0.10.0
libtpu: 0.0.40
codegen_flags: <defaults>
</compile_context>

<pallas_src>
import jax
import jax.numpy as jnp
from jax.experimental import pallas as pl
from jax.experimental.pallas import tpu as pltpu


def _affine_relu_kernel(x_ref, o_ref):
    x = x_ref[...]
    y = x * 3 + 2                      # (x + 2) * 3 - 4  ==  3*x + 2
    o_ref[...] = jnp.maximum(y, 0)


def pt_module_forward(x):
    """Elementwise relu((x + 2) * 3 - 4) via a Pallas TPU kernel."""
    orig_shape = x.shape
    dtype = x.dtype
    n = x.size

    # Pick the widest lane-dense slab width W (multiple of 128) dividing n.
    W = None
    for cand in (2048, 1024, 512, 256, 128):
        if n % cand == 0:
            W = cand
            break

    if W is None:
        # Rare fallback: pad the flat vector so it tiles as (8k, 128).
        W = 128
        pad = (-n) % (8 * W)
        flat = jnp.concatenate([x.reshape(-1), jnp.zeros((pad,), dtype)])
    else:
        flat = x.reshape(-1)

    rows = flat.size // W
    slab = flat.reshape(rows, W)

    # Block sizing: ~4 MiB per input block (rows multiple of 8).
    itemsize = jnp.dtype(dtype).itemsize
    target_bytes = 4 * 1024 * 1024
    block_rows = max(8, (target_bytes // (itemsize * W)) // 8 * 8)
    if block_rows >= rows:
        block_rows = rows              # full-extent block (valid for any rows)
        grid = (1,)
    else:
        grid = (pl.cdiv(rows, block_rows),)   # ragged last block is masked

    out_slab = pl.pallas_call(
        _affine_relu_kernel,
        out_shape=jax.ShapeDtypeStruct((rows, W), dtype),
        grid_spec=pltpu.PrefetchScalarGridSpec(
            num_scalar_prefetch=0,
            grid=grid,
            in_specs=[pl.BlockSpec((block_rows, W), lambda i: (i, 0))],
            out_specs=pl.BlockSpec((block_rows, W), lambda i: (i, 0)),
        ),
        compiler_params=pltpu.CompilerParams(
            dimension_semantics=("parallel",),
            vmem_limit_bytes=32 * 1024 * 1024,
        ),
    )(slab)

    out_flat = out_slab.reshape(-1)
    if out_flat.size != n:
        out_flat = out_flat[:n]        # drop padded tail (fallback path only)
    return out_flat.reshape(orig_shape)


if __name__ == "__main__":
    key = jax.random.PRNGKey(0)
    # Small NCHW-style input consistent with the module's >=3D indexing.
    x = jax.random.normal(key, (2, 4, 16, 16), dtype=jnp.float32)

    out = pt_module_forward(x)
    jax.block_until_ready(out)

    # Sanity-check against a plain JAX reference.
    ref = jnp.maximum((x + 2.0) * 3.0 - 4.0, 0.0)
    assert out.shape == x.shape and out.dtype == x.dtype
    assert jnp.allclose(out, ref, atol=1e-6), "mismatch vs reference"

    print("KERNEL_OK")
</pallas_src>

<mosaic_0001>
module attributes {stable_mosaic.version = 11 : i64} {
  func.func @_affine_relu_kernel(%arg0: i32, %arg1: memref<1x2048xf32, #tpu.memory_space<vmem>>, %arg2: memref<1x2048xf32, #tpu.memory_space<vmem>>) attributes {dimension_semantics = [#tpu.dimension_semantics<parallel>], iteration_bounds = array<i64: 1>, scalar_prefetch = 0 : i64, scratch_operands = 0 : i64, tpu.core_type = #tpu.core_type<tc>, window_params = [{transform_indices = @transform_0, window_bounds = array<i64: 1, 2048>}, {transform_indices = @transform_1, window_bounds = array<i64: 1, 2048>}]} {
    %c0 = arith.constant 0 : index
    %c0_0 = arith.constant 0 : index
    %0 = vector.load %arg1[%c0, %c0_0] : memref<1x2048xf32, #tpu.memory_space<vmem>>, vector<1x2048xf32>
    %cst = arith.constant 3.000000e+00 : f32
    %1 = vector.broadcast %cst : f32 to vector<1x2048xf32>
    %2 = arith.mulf %0, %1 : vector<1x2048xf32>
    %cst_1 = arith.constant 2.000000e+00 : f32
    %3 = vector.broadcast %cst_1 : f32 to vector<1x2048xf32>
    %4 = arith.addf %2, %3 : vector<1x2048xf32>
    %cst_2 = arith.constant 0.000000e+00 : f32
    %5 = vector.broadcast %cst_2 : f32 to vector<1x2048xf32>
    %6 = arith.maximumf %4, %5 : vector<1x2048xf32>
    %c0_3 = arith.constant 0 : index
    %c0_4 = arith.constant 0 : index
    %7 = vector.load %arg2[%c0_3, %c0_4] : memref<1x2048xf32, #tpu.memory_space<vmem>>, vector<1x2048xf32>
    tpu.vector_store %arg2[%c0_3, %c0_4], %6 {strides = array<i32>} : memref<1x2048xf32, #tpu.memory_space<vmem>>, vector<1x2048xf32>,
    return
  }
  func.func @transform_0(%arg0: i32) -> (i32, i32) {
    %c0_i32 = arith.constant 0 : i32
    %c0_i32_0 = arith.constant 0 : i32
    return %arg0, %c0_i32 : i32, i32
  }
  func.func @transform_1(%arg0: i32) -> (i32, i32) {
    %c0_i32 = arith.constant 0 : i32
    %c0_i32_0 = arith.constant 0 : i32
    return %arg0, %c0_i32 : i32, i32
  }
}

</mosaic_0001>

<bundles_post_ra>
// kernel: tpu_custom_call.1
= control target key start
LH: loop header
LB: loop body
LE: loop exit
PB: predicated region body
PF: predicated region fallthrough
CT: control target
= control target key end

     0   :  { %6 = vsyncpa [#allocation3], 0  ;;  %s132_s0 = inlined_call_operand.hbm [shape: f32[1,2048], index: 0, kind: input, shape index: {}]   ;;  %s133_s1 = inlined_call_operand.hbm [shape: f32[1,2048], index: 1, kind: output, shape index: {}]  }
   0x1   :  { %7 = vsyncpa [#allocation4], 0  ;;  %s96_s6 = smov [#allocation2]   ;;  %s48_s10 = scalar_lea.hbm %s132_s0, 256 }
   0x2   :  { %s14_s7 = sshll.u32 %s96_s6, 4  ;;  %p49_p0 = scmp.ne.s32.totalorder %s132_s0, %s48_s10  ;;  %s15_s7 = int_to_ptr.vmem [resolvable:$true] %s14_s7 }
   0x3   :  { %p52_p1 = scmp.lt.u32.totalorder %s48_s10, %s132_s0 }
   0x5   :  { %p54_p2 = pnand %p52_p1, %p49_p0 }
   0x7   :  { %57 = shalt.err (!%p54_p2)
}
   0x8   :  { %s58_s15 = scalar_lea.vmem %s15_s7, 256  ;;  %p63_p4 = scmp.lt.s32.totalorder %s15_s7, %s15_s7 }
   0x9   :  { %p59_p3 = scmp.ne.s32.totalorder %s15_s7, %s58_s15  ;;  %p64_p5 = scmp.lt.s32.totalorder %s58_s15, %s58_s15 }
   0xb   :  { %p65_p6 = por %p64_p5, %p63_p4 }
   0xd   :  { %p66_p7 = pnand %p65_p6, %p59_p3 }
   0xf   :  { %69 = shalt.err (!%p66_p7)
}
  0x10   :  { %17 = dma.hbm_to_vmem [thread:$0]  %s132_s0, 256, %s15_s7, [#allocation3]  }
  0x11   :  { %92 = dma.done.wait [#allocation3], 256  }
  0x12   :  { %93 = vsyncadd [#allocation3], 4294967040  ;;  %v21_v0 = vld [vmem:[#allocation2] sm:$0xff]  ;;  %v22_v1 = vld [vmem:[#allocation2 + $0x8] sm:$0xff]  ;;  %s97_s18 = smov [#allocation5]  }
  0x13   :  { %v23_v2 = vmul.f32 3.0, %v21_v0  ;;  %v24_v3 = vmul.f32 3.0, %v22_v1  ;;  %s37_s19 = sshll.u32 %s97_s18, 4  ;;  %s38_s19 = int_to_ptr.vmem [resolvable:$true] %s37_s19 }
  0x14   :  { %s70_s20 = scalar_lea.vmem %s38_s19, 256  ;;  %p75_p9 = scmp.lt.s32.totalorder %s38_s19, %s38_s19 }
  0x15   :  { %v25_v4 = vadd.f32 2.0, %v23_v2  ;;  %v26_v5 = vadd.f32 2.0, %v24_v3  ;;  %p71_p8 = scmp.ne.s32.totalorder %s38_s19, %s70_s20  ;;  %p76_p10 = scmp.lt.s32.totalorder %s70_s20, %s70_s20 }
  0x17   :  { %v27_v6 = vmax.f32 %v25_v4, 0.0  ;;  %v28_v7 = vmax.f32 %v26_v5, 0.0  ;;  %p77_p11 = por %p76_p10, %p75_p9 }
  0x19   :  { %29 = vst [vmem:[#allocation5] sm:$0xff] %v27_v6  ;;  %30 = vst [vmem:[#allocation5 + $0x8] sm:$0xff] %v28_v7  ;;  %p78_p12 = pnand %p77_p11, %p71_p8 }
  0x1b   :  { %81 = shalt.err (!%p78_p12)
}
  0x1c   :  { %s82_s22 = scalar_lea.hbm %s133_s1, 256 }
  0x1d   :  { %p83_p13 = scmp.ne.s32.totalorder %s133_s1, %s82_s22  ;;  %p86_p0 = scmp.lt.u32.totalorder %s82_s22, %s133_s1 }
  0x1f   :  { %p88_p1 = pnand %p86_p0, %p83_p13 }
  0x21   :  { %91 = shalt.err (!%p88_p1)
}
  0x22   :  { %40 = dma.vmem_to_hbm [thread:$0]  %s38_s19, 256, %s133_s1, [#allocation4]  }
  0x23   :  { %94 = dma.done.wait [#allocation4], 256  }
  0x24   :  { %95 = vsyncadd [#allocation4], 4294967040 }
  0x25   :  { %44 = vsyncpa [#allocation3], 1 }
  0x26   :  { %45 = vsyncpa [#allocation4], 1 }

</bundles_post_ra>
